<compile_context>
chip_gen: v7x
topology: tpu7x:2x2x1
jax: 0.10.0
libtpu: 0.0.40
codegen_flags: <defaults>
</compile_context>

<pallas_src>
import math
import jax
import jax.numpy as jnp
from jax.experimental import pallas as pl
from jax.experimental.pallas import tpu as pltpu


def gru_model_kernel(gx_ref, wh_ref, wfc_ref, bfc_ref, out_ref):
    # gx_ref  : (T, B, 3*Hp) f32  precomputed seq@Wx + bias, time-major;
    #                             r/z gate columns pre-scaled by 0.5 (sigmoid fold)
    # wh_ref  : (Hp, 3*Hp)  bf16  h->gates weights; r/z columns pre-scaled by 0.5;
    #                             padded rows AND padded gate columns are zero
    # wfc_ref : (Hp, Cp)    f32   final linear, padded rows/cols zero
    # bfc_ref : (1, Cp)     f32
    # out_ref : (B, Cp)     f32   lane-dense (Cp = 128) output block
    T, B, G = gx_ref.shape
    Hp = wh_ref.shape[0]

    wh = wh_ref[...]                                   # (Hp, 3*Hp) bf16, stays resident
    h = jnp.zeros((B, Hp), jnp.float32)                # vreg-resident hidden state

    # Static unroll over the short time dimension (T=6); only h @ Wh is serial work.
    # For much larger T, switch to lax.fori_loop(unroll=2) to bound live ranges.
    for t in range(T):
        gx = gx_ref[t]                                 # (B, 3*Hp) aligned slab load
        gh = jnp.dot(h.astype(jnp.bfloat16), wh,       # bf16 MXU operands, f32 accum
                     preferred_element_type=jnp.float32)

        # r and z in one fused activation over a contiguous 2*Hp slice.
        # Inputs were pre-scaled by 0.5, so sigmoid(x) == 0.5 * (1 + tanh(x_scaled)).
        rz = 0.5 * (1.0 + jnp.tanh(gx[:, :2 * Hp] + gh[:, :2 * Hp]))
        r = rz[:, :Hp]
        z = rz[:, Hp:]

        # new gate: b_h already folded into gx (module applies b_h outside r*h_h)
        n = jnp.tanh(gx[:, 2 * Hp:] + r * gh[:, 2 * Hp:])
        h = n + z * (h - n)

    logits = jnp.dot(h, wfc_ref[...],
                     preferred_element_type=jnp.float32) + bfc_ref[...]
    out_ref[...] = logits.astype(out_ref.dtype)        # unmasked lane-dense store


def _pad_gates(w, H, Hp):
    """(..., 3*H) -> (..., 3*Hp): zero-pad each gate block to Hp lanes."""
    lead = w.shape[:-1]
    w3 = w.reshape(*lead, 3, H)
    w3 = jnp.pad(w3, [(0, 0)] * len(lead) + [(0, 0), (0, Hp - H)])
    return w3.reshape(*lead, 3 * Hp)


@jax.jit
def gru_model_forward(sequence, wx, wh, bias, wfc, bfc):
    """sequence: (B, T, I); wx: (I, 3H); wh: (H, 3H); bias: (1, 3H);
    wfc: (H, C); bfc: (1, C).  Returns logits (B, C) in float32."""
    B, T, I = sequence.shape
    H = wh.shape[0]
    C = wfc.shape[1]
    Hp = max(128, ((H + 127) // 128) * 128)            # lane-aligned hidden size
    Cp = max(128, ((C + 127) // 128) * 128)            # lane-dense output width

    # Lane-aligned, zero-padded gate layouts (gates at lane offsets 0 / Hp / 2*Hp).
    wx_p = _pad_gates(wx, H, Hp).astype(jnp.float32)               # (I, 3*Hp)
    b_p = _pad_gates(bias, H, Hp).astype(jnp.float32)              # (1, 3*Hp)
    wh_p = _pad_gates(wh, H, Hp)                                   # (H, 3*Hp)
    wh_p = jnp.pad(wh_p, [(0, Hp - H), (0, 0)]).astype(jnp.float32)  # (Hp, 3*Hp)

    # Fold the 0.5 pre-scale of sigmoid(x) = 0.5*(1 + tanh(0.5*x)) into the r/z columns.
    scale = jnp.concatenate([jnp.full((2 * Hp,), 0.5, jnp.float32),
                             jnp.ones((Hp,), jnp.float32)])
    wx_p = wx_p * scale
    b_p = b_p * scale
    wh_p = (wh_p * scale).astype(jnp.bfloat16)         # bf16 MXU operand for recurrence

    # Hoisted input projection + bias for all timesteps, time-major: (T, B, 3*Hp).
    # The transpose/pad/bias all fuse into this one XLA matmul under jit.
    gx_all = (jnp.einsum('bti,ig->tbg', sequence.astype(jnp.float32), wx_p,
                         preferred_element_type=jnp.float32) + b_p)

    # Lane-dense final linear (padded rows/cols are zero -> padded output lanes are 0).
    wfc_p = jnp.pad(wfc.astype(jnp.float32), [(0, Hp - H), (0, Cp - C)])   # (Hp, Cp)
    bfc_p = jnp.pad(bfc.astype(jnp.float32), [(0, 0), (0, Cp - C)])        # (1, Cp)

    out = pl.pallas_call(
        gru_model_kernel,
        out_shape=jax.ShapeDtypeStruct((B, Cp), jnp.float32),
        in_specs=[
            pl.BlockSpec(memory_space=pltpu.MemorySpace.VMEM),   # gx_all
            pl.BlockSpec(memory_space=pltpu.MemorySpace.VMEM),   # wh (bf16)
            pl.BlockSpec(memory_space=pltpu.MemorySpace.VMEM),   # wfc
            pl.BlockSpec(memory_space=pltpu.MemorySpace.VMEM),   # bfc
        ],
        out_specs=pl.BlockSpec(memory_space=pltpu.MemorySpace.VMEM),
    )(gx_all, wh_p, wfc_p, bfc_p)

    return out[:, :C]


def gru_model_reference(sequence, wx, wh, bias, wfc, bfc):
    B, T, I = sequence.shape
    H = wh.shape[0]
    h = jnp.zeros((B, H), jnp.float32)
    b_r, b_z, b_h = bias[0, :H], bias[0, H:2 * H], bias[0, 2 * H:]
    for t in range(T):
        gx = sequence[:, t, :] @ wx
        gh = h @ wh
        r = jax.nn.sigmoid(gx[:, :H] + gh[:, :H] + b_r)
        z = jax.nn.sigmoid(gx[:, H:2 * H] + gh[:, H:2 * H] + b_z)
        n = jnp.tanh(gx[:, 2 * H:] + r * gh[:, 2 * H:] + b_h)
        h = n + z * (h - n)
    return h @ wfc + bfc


if __name__ == "__main__":
    # small shapes consistent with the module: (batch, seq_len=bptt, input_size)
    B, T, I, H, C = 8, 6, 2, 64, 1

    key = jax.random.PRNGKey(0)
    k_seq, k_wx, k_wh, k_b, k_wfc, k_bfc = jax.random.split(key, 6)

    std = 1.0 / math.sqrt(H)  # GRUCell.reset_parameters: uniform(-std, std)
    sequence = jax.random.normal(k_seq, (B, T, I), jnp.float32)
    # x2h: Linear(I, 3H, bias=False) -> weight (3H, I); stored transposed (I, 3H)
    wx = jax.random.uniform(k_wx, (I, 3 * H), jnp.float32, -std, std)
    # h2h: Linear(H, 3H, bias=False) -> weight (3H, H); stored transposed (H, 3H)
    wh = jax.random.uniform(k_wh, (H, 3 * H), jnp.float32, -std, std)
    # explicit gate bias parameter (3H,), kept as (1, 3H) for 2-D layout
    bias = jax.random.uniform(k_b, (1, 3 * H), jnp.float32, -std, std)
    # fc: Linear(H, C)
    wfc = jax.random.uniform(k_wfc, (H, C), jnp.float32, -std, std)
    bfc = jax.random.uniform(k_bfc, (1, C), jnp.float32, -std, std)

    out = gru_model_forward(sequence, wx, wh, bias, wfc, bfc)
    out = jax.block_until_ready(out)

    ref = gru_model_reference(sequence, wx, wh, bias, wfc, bfc)
    assert out.shape == (B, C)
    # Tolerance loosened (1e-4 -> 2e-2) because the recurrence matmul uses bf16 MXU
    # operands (f32 accumulation); observed error is ~1e-3 absolute at these shapes.
    assert jnp.allclose(out, ref, atol=2e-2, rtol=2e-2), "mismatch vs reference"

    print("KERNEL_OK")
</pallas_src>

<mosaic_0001>
module attributes {stable_mosaic.version = 11 : i64} {
  func.func @gru_model_kernel(%arg0: memref<6x8x384xf32, #tpu.memory_space<vmem>>, %arg1: memref<128x384xbf16, #tpu.memory_space<vmem>>, %arg2: memref<128x128xf32, #tpu.memory_space<vmem>>, %arg3: memref<1x128xf32, #tpu.memory_space<vmem>>, %arg4: memref<8x128xf32, #tpu.memory_space<vmem>>) attributes {dimension_semantics = [], scalar_prefetch = 0 : i64, scratch_operands = 0 : i64, tpu.core_type = #tpu.core_type<tc>} {
    %c0 = arith.constant 0 : index
    %c0_0 = arith.constant 0 : index
    %0 = vector.load %arg1[%c0, %c0_0] : memref<128x384xbf16, #tpu.memory_space<vmem>>, vector<128x384xbf16>
    %cst = arith.constant 0.000000e+00 : f32
    %1 = vector.broadcast %cst : f32 to vector<8x128xf32>
    %c0_1 = arith.constant 0 : index
    %c0_2 = arith.constant 0 : index
    %c0_3 = arith.constant 0 : index
    %2 = vector.load %arg0[%c0_1, %c0_2, %c0_3] : memref<6x8x384xf32, #tpu.memory_space<vmem>>, vector<1x8x384xf32>
    %3 = vector.shape_cast %2 : vector<1x8x384xf32> to vector<8x384xf32>
    %4 = arith.truncf %1 : vector<8x128xf32> to vector<8x128xbf16>
    %cst_4 = arith.constant dense<0.000000e+00> : vector<8x384xf32>
    %5 = tpu.matmul %4, %0, %cst_4 {dimension_numbers = #tpu.dot_dimension_numbers<[1], [0], [0], [1], [0, 0, 1, 1], [], []>} : vector<8x128xbf16>, vector<128x384xbf16>, vector<8x384xf32> -> vector<8x384xf32>
    %6 = vector.extract_strided_slice %3 {offsets = [0, 0], sizes = [8, 256], strides = [1, 1]} : vector<8x384xf32> to vector<8x256xf32>
    %7 = vector.extract_strided_slice %5 {offsets = [0, 0], sizes = [8, 256], strides = [1, 1]} : vector<8x384xf32> to vector<8x256xf32>
    %8 = arith.addf %6, %7 : vector<8x256xf32>
    %9 = math.tanh %8 : vector<8x256xf32>
    %cst_5 = arith.constant 1.000000e+00 : f32
    %10 = vector.broadcast %cst_5 : f32 to vector<8x256xf32>
    %11 = arith.addf %10, %9 : vector<8x256xf32>
    %cst_6 = arith.constant 5.000000e-01 : f32
    %12 = vector.broadcast %cst_6 : f32 to vector<8x256xf32>
    %13 = arith.mulf %12, %11 : vector<8x256xf32>
    %14 = vector.extract_strided_slice %13 {offsets = [0, 0], sizes = [8, 128], strides = [1, 1]} : vector<8x256xf32> to vector<8x128xf32>
    %15 = vector.extract_strided_slice %13 {offsets = [0, 128], sizes = [8, 128], strides = [1, 1]} : vector<8x256xf32> to vector<8x128xf32>
    %16 = vector.extract_strided_slice %3 {offsets = [0, 256], sizes = [8, 128], strides = [1, 1]} : vector<8x384xf32> to vector<8x128xf32>
    %17 = vector.extract_strided_slice %5 {offsets = [0, 256], sizes = [8, 128], strides = [1, 1]} : vector<8x384xf32> to vector<8x128xf32>
    %18 = arith.mulf %14, %17 : vector<8x128xf32>
    %19 = arith.addf %16, %18 : vector<8x128xf32>
    %20 = math.tanh %19 : vector<8x128xf32>
    %21 = arith.subf %1, %20 : vector<8x128xf32>
    %22 = arith.mulf %15, %21 : vector<8x128xf32>
    %23 = arith.addf %20, %22 : vector<8x128xf32>
    %c1 = arith.constant 1 : index
    %c0_7 = arith.constant 0 : index
    %c0_8 = arith.constant 0 : index
    %24 = vector.load %arg0[%c1, %c0_7, %c0_8] : memref<6x8x384xf32, #tpu.memory_space<vmem>>, vector<1x8x384xf32>
    %25 = vector.shape_cast %24 : vector<1x8x384xf32> to vector<8x384xf32>
    %26 = arith.truncf %23 : vector<8x128xf32> to vector<8x128xbf16>
    %cst_9 = arith.constant dense<0.000000e+00> : vector<8x384xf32>
    %27 = tpu.matmul %26, %0, %cst_9 {dimension_numbers = #tpu.dot_dimension_numbers<[1], [0], [0], [1], [0, 0, 1, 1], [], []>} : vector<8x128xbf16>, vector<128x384xbf16>, vector<8x384xf32> -> vector<8x384xf32>
    %28 = vector.extract_strided_slice %25 {offsets = [0, 0], sizes = [8, 256], strides = [1, 1]} : vector<8x384xf32> to vector<8x256xf32>
    %29 = vector.extract_strided_slice %27 {offsets = [0, 0], sizes = [8, 256], strides = [1, 1]} : vector<8x384xf32> to vector<8x256xf32>
    %30 = arith.addf %28, %29 : vector<8x256xf32>
    %31 = math.tanh %30 : vector<8x256xf32>
    %cst_10 = arith.constant 1.000000e+00 : f32
    %32 = vector.broadcast %cst_10 : f32 to vector<8x256xf32>
    %33 = arith.addf %32, %31 : vector<8x256xf32>
    %cst_11 = arith.constant 5.000000e-01 : f32
    %34 = vector.broadcast %cst_11 : f32 to vector<8x256xf32>
    %35 = arith.mulf %34, %33 : vector<8x256xf32>
    %36 = vector.extract_strided_slice %35 {offsets = [0, 0], sizes = [8, 128], strides = [1, 1]} : vector<8x256xf32> to vector<8x128xf32>
    %37 = vector.extract_strided_slice %35 {offsets = [0, 128], sizes = [8, 128], strides = [1, 1]} : vector<8x256xf32> to vector<8x128xf32>
    %38 = vector.extract_strided_slice %25 {offsets = [0, 256], sizes = [8, 128], strides = [1, 1]} : vector<8x384xf32> to vector<8x128xf32>
    %39 = vector.extract_strided_slice %27 {offsets = [0, 256], sizes = [8, 128], strides = [1, 1]} : vector<8x384xf32> to vector<8x128xf32>
    %40 = arith.mulf %36, %39 : vector<8x128xf32>
    %41 = arith.addf %38, %40 : vector<8x128xf32>
    %42 = math.tanh %41 : vector<8x128xf32>
    %43 = arith.subf %23, %42 : vector<8x128xf32>
    %44 = arith.mulf %37, %43 : vector<8x128xf32>
    %45 = arith.addf %42, %44 : vector<8x128xf32>
    %c2 = arith.constant 2 : index
    %c0_12 = arith.constant 0 : index
    %c0_13 = arith.constant 0 : index
    %46 = vector.load %arg0[%c2, %c0_12, %c0_13] : memref<6x8x384xf32, #tpu.memory_space<vmem>>, vector<1x8x384xf32>
    %47 = vector.shape_cast %46 : vector<1x8x384xf32> to vector<8x384xf32>
    %48 = arith.truncf %45 : vector<8x128xf32> to vector<8x128xbf16>
    %cst_14 = arith.constant dense<0.000000e+00> : vector<8x384xf32>
    %49 = tpu.matmul %48, %0, %cst_14 {dimension_numbers = #tpu.dot_dimension_numbers<[1], [0], [0], [1], [0, 0, 1, 1], [], []>} : vector<8x128xbf16>, vector<128x384xbf16>, vector<8x384xf32> -> vector<8x384xf32>
    %50 = vector.extract_strided_slice %47 {offsets = [0, 0], sizes = [8, 256], strides = [1, 1]} : vector<8x384xf32> to vector<8x256xf32>
    %51 = vector.extract_strided_slice %49 {offsets = [0, 0], sizes = [8, 256], strides = [1, 1]} : vector<8x384xf32> to vector<8x256xf32>
    %52 = arith.addf %50, %51 : vector<8x256xf32>
    %53 = math.tanh %52 : vector<8x256xf32>
    %cst_15 = arith.constant 1.000000e+00 : f32
    %54 = vector.broadcast %cst_15 : f32 to vector<8x256xf32>
    %55 = arith.addf %54, %53 : vector<8x256xf32>
    %cst_16 = arith.constant 5.000000e-01 : f32
    %56 = vector.broadcast %cst_16 : f32 to vector<8x256xf32>
    %57 = arith.mulf %56, %55 : vector<8x256xf32>
    %58 = vector.extract_strided_slice %57 {offsets = [0, 0], sizes = [8, 128], strides = [1, 1]} : vector<8x256xf32> to vector<8x128xf32>
    %59 = vector.extract_strided_slice %57 {offsets = [0, 128], sizes = [8, 128], strides = [1, 1]} : vector<8x256xf32> to vector<8x128xf32>
    %60 = vector.extract_strided_slice %47 {offsets = [0, 256], sizes = [8, 128], strides = [1, 1]} : vector<8x384xf32> to vector<8x128xf32>
    %61 = vector.extract_strided_slice %49 {offsets = [0, 256], sizes = [8, 128], strides = [1, 1]} : vector<8x384xf32> to vector<8x128xf32>
    %62 = arith.mulf %58, %61 : vector<8x128xf32>
    %63 = arith.addf %60, %62 : vector<8x128xf32>
    %64 = math.tanh %63 : vector<8x128xf32>
    %65 = arith.subf %45, %64 : vector<8x128xf32>
    %66 = arith.mulf %59, %65 : vector<8x128xf32>
    %67 = arith.addf %64, %66 : vector<8x128xf32>
    %c3 = arith.constant 3 : index
    %c0_17 = arith.constant 0 : index
    %c0_18 = arith.constant 0 : index
    %68 = vector.load %arg0[%c3, %c0_17, %c0_18] : memref<6x8x384xf32, #tpu.memory_space<vmem>>, vector<1x8x384xf32>
    %69 = vector.shape_cast %68 : vector<1x8x384xf32> to vector<8x384xf32>
    %70 = arith.truncf %67 : vector<8x128xf32> to vector<8x128xbf16>
    %cst_19 = arith.constant dense<0.000000e+00> : vector<8x384xf32>
    %71 = tpu.matmul %70, %0, %cst_19 {dimension_numbers = #tpu.dot_dimension_numbers<[1], [0], [0], [1], [0, 0, 1, 1], [], []>} : vector<8x128xbf16>, vector<128x384xbf16>, vector<8x384xf32> -> vector<8x384xf32>
    %72 = vector.extract_strided_slice %69 {offsets = [0, 0], sizes = [8, 256], strides = [1, 1]} : vector<8x384xf32> to vector<8x256xf32>
    %73 = vector.extract_strided_slice %71 {offsets = [0, 0], sizes = [8, 256], strides = [1, 1]} : vector<8x384xf32> to vector<8x256xf32>
    %74 = arith.addf %72, %73 : vector<8x256xf32>
    %75 = math.tanh %74 : vector<8x256xf32>
    %cst_20 = arith.constant 1.000000e+00 : f32
    %76 = vector.broadcast %cst_20 : f32 to vector<8x256xf32>
    %77 = arith.addf %76, %75 : vector<8x256xf32>
    %cst_21 = arith.constant 5.000000e-01 : f32
    %78 = vector.broadcast %cst_21 : f32 to vector<8x256xf32>
    %79 = arith.mulf %78, %77 : vector<8x256xf32>
    %80 = vector.extract_strided_slice %79 {offsets = [0, 0], sizes = [8, 128], strides = [1, 1]} : vector<8x256xf32> to vector<8x128xf32>
    %81 = vector.extract_strided_slice %79 {offsets = [0, 128], sizes = [8, 128], strides = [1, 1]} : vector<8x256xf32> to vector<8x128xf32>
    %82 = vector.extract_strided_slice %69 {offsets = [0, 256], sizes = [8, 128], strides = [1, 1]} : vector<8x384xf32> to vector<8x128xf32>
    %83 = vector.extract_strided_slice %71 {offsets = [0, 256], sizes = [8, 128], strides = [1, 1]} : vector<8x384xf32> to vector<8x128xf32>
    %84 = arith.mulf %80, %83 : vector<8x128xf32>
    %85 = arith.addf %82, %84 : vector<8x128xf32>
    %86 = math.tanh %85 : vector<8x128xf32>
    %87 = arith.subf %67, %86 : vector<8x128xf32>
    %88 = arith.mulf %81, %87 : vector<8x128xf32>
    %89 = arith.addf %86, %88 : vector<8x128xf32>
    %c4 = arith.constant 4 : index
    %c0_22 = arith.constant 0 : index
    %c0_23 = arith.constant 0 : index
    %90 = vector.load %arg0[%c4, %c0_22, %c0_23] : memref<6x8x384xf32, #tpu.memory_space<vmem>>, vector<1x8x384xf32>
    %91 = vector.shape_cast %90 : vector<1x8x384xf32> to vector<8x384xf32>
    %92 = arith.truncf %89 : vector<8x128xf32> to vector<8x128xbf16>
    %cst_24 = arith.constant dense<0.000000e+00> : vector<8x384xf32>
    %93 = tpu.matmul %92, %0, %cst_24 {dimension_numbers = #tpu.dot_dimension_numbers<[1], [0], [0], [1], [0, 0, 1, 1], [], []>} : vector<8x128xbf16>, vector<128x384xbf16>, vector<8x384xf32> -> vector<8x384xf32>
    %94 = vector.extract_strided_slice %91 {offsets = [0, 0], sizes = [8, 256], strides = [1, 1]} : vector<8x384xf32> to vector<8x256xf32>
    %95 = vector.extract_strided_slice %93 {offsets = [0, 0], sizes = [8, 256], strides = [1, 1]} : vector<8x384xf32> to vector<8x256xf32>
    %96 = arith.addf %94, %95 : vector<8x256xf32>
    %97 = math.tanh %96 : vector<8x256xf32>
    %cst_25 = arith.constant 1.000000e+00 : f32
    %98 = vector.broadcast %cst_25 : f32 to vector<8x256xf32>
    %99 = arith.addf %98, %97 : vector<8x256xf32>
    %cst_26 = arith.constant 5.000000e-01 : f32
    %100 = vector.broadcast %cst_26 : f32 to vector<8x256xf32>
    %101 = arith.mulf %100, %99 : vector<8x256xf32>
    %102 = vector.extract_strided_slice %101 {offsets = [0, 0], sizes = [8, 128], strides = [1, 1]} : vector<8x256xf32> to vector<8x128xf32>
    %103 = vector.extract_strided_slice %101 {offsets = [0, 128], sizes = [8, 128], strides = [1, 1]} : vector<8x256xf32> to vector<8x128xf32>
    %104 = vector.extract_strided_slice %91 {offsets = [0, 256], sizes = [8, 128], strides = [1, 1]} : vector<8x384xf32> to vector<8x128xf32>
    %105 = vector.extract_strided_slice %93 {offsets = [0, 256], sizes = [8, 128], strides = [1, 1]} : vector<8x384xf32> to vector<8x128xf32>
    %106 = arith.mulf %102, %105 : vector<8x128xf32>
    %107 = arith.addf %104, %106 : vector<8x128xf32>
    %108 = math.tanh %107 : vector<8x128xf32>
    %109 = arith.subf %89, %108 : vector<8x128xf32>
    %110 = arith.mulf %103, %109 : vector<8x128xf32>
    %111 = arith.addf %108, %110 : vector<8x128xf32>
    %c5 = arith.constant 5 : index
    %c0_27 = arith.constant 0 : index
    %c0_28 = arith.constant 0 : index
    %112 = vector.load %arg0[%c5, %c0_27, %c0_28] : memref<6x8x384xf32, #tpu.memory_space<vmem>>, vector<1x8x384xf32>
    %113 = vector.shape_cast %112 : vector<1x8x384xf32> to vector<8x384xf32>
    %114 = arith.truncf %111 : vector<8x128xf32> to vector<8x128xbf16>
    %cst_29 = arith.constant dense<0.000000e+00> : vector<8x384xf32>
    %115 = tpu.matmul %114, %0, %cst_29 {dimension_numbers = #tpu.dot_dimension_numbers<[1], [0], [0], [1], [0, 0, 1, 1], [], []>} : vector<8x128xbf16>, vector<128x384xbf16>, vector<8x384xf32> -> vector<8x384xf32>
    %116 = vector.extract_strided_slice %113 {offsets = [0, 0], sizes = [8, 256], strides = [1, 1]} : vector<8x384xf32> to vector<8x256xf32>
    %117 = vector.extract_strided_slice %115 {offsets = [0, 0], sizes = [8, 256], strides = [1, 1]} : vector<8x384xf32> to vector<8x256xf32>
    %118 = arith.addf %116, %117 : vector<8x256xf32>
    %119 = math.tanh %118 : vector<8x256xf32>
    %cst_30 = arith.constant 1.000000e+00 : f32
    %120 = vector.broadcast %cst_30 : f32 to vector<8x256xf32>
    %121 = arith.addf %120, %119 : vector<8x256xf32>
    %cst_31 = arith.constant 5.000000e-01 : f32
    %122 = vector.broadcast %cst_31 : f32 to vector<8x256xf32>
    %123 = arith.mulf %122, %121 : vector<8x256xf32>
    %124 = vector.extract_strided_slice %123 {offsets = [0, 0], sizes = [8, 128], strides = [1, 1]} : vector<8x256xf32> to vector<8x128xf32>
    %125 = vector.extract_strided_slice %123 {offsets = [0, 128], sizes = [8, 128], strides = [1, 1]} : vector<8x256xf32> to vector<8x128xf32>
    %126 = vector.extract_strided_slice %113 {offsets = [0, 256], sizes = [8, 128], strides = [1, 1]} : vector<8x384xf32> to vector<8x128xf32>
    %127 = vector.extract_strided_slice %115 {offsets = [0, 256], sizes = [8, 128], strides = [1, 1]} : vector<8x384xf32> to vector<8x128xf32>
    %128 = arith.mulf %124, %127 : vector<8x128xf32>
    %129 = arith.addf %126, %128 : vector<8x128xf32>
    %130 = math.tanh %129 : vector<8x128xf32>
    %131 = arith.subf %111, %130 : vector<8x128xf32>
    %132 = arith.mulf %125, %131 : vector<8x128xf32>
    %133 = arith.addf %130, %132 : vector<8x128xf32>
    %c0_32 = arith.constant 0 : index
    %c0_33 = arith.constant 0 : index
    %134 = vector.load %arg2[%c0_32, %c0_33] : memref<128x128xf32, #tpu.memory_space<vmem>>, vector<128x128xf32>
    %cst_34 = arith.constant dense<0.000000e+00> : vector<8x128xf32>
    %135 = tpu.matmul %133, %134, %cst_34 {dimension_numbers = #tpu.dot_dimension_numbers<[1], [0], [0], [1], [0, 0, 1, 1], [], []>} : vector<8x128xf32>, vector<128x128xf32>, vector<8x128xf32> -> vector<8x128xf32>
    %c0_35 = arith.constant 0 : index
    %c0_36 = arith.constant 0 : index
    %136 = vector.load %arg3[%c0_35, %c0_36] : memref<1x128xf32, #tpu.memory_space<vmem>>, vector<1x128xf32>
    %137 = vector.broadcast %136 : vector<1x128xf32> to vector<8x128xf32>
    %138 = arith.addf %135, %137 : vector<8x128xf32>
    %c0_37 = arith.constant 0 : index
    %c0_38 = arith.constant 0 : index
    %139 = vector.load %arg4[%c0_37, %c0_38] : memref<8x128xf32, #tpu.memory_space<vmem>>, vector<8x128xf32>
    tpu.vector_store %arg4[%c0_37, %c0_38], %138 {strides = array<i32>} : memref<8x128xf32, #tpu.memory_space<vmem>>, vector<8x128xf32>,
    return
  }
}

</mosaic_0001>

<bundles_post_ra>
// kernel: gru_model_forward.1
= control target key start
LH: loop header
LB: loop body
LE: loop exit
PB: predicated region body
PF: predicated region fallthrough
CT: control target
= control target key end

     0   :  { %v1236_v1 = vmov 0.0   ;;  %v1237_v2 = vmov 0   ;;  %vm1238_vm0 = vmmov 0   ;;  %s1732_s1 = inlined_call_operand.vmem [shape: bf16[128,384], index: 1, kind: input, shape index: {}]   ;;  %s1733_s0 = inlined_call_operand.vmem [shape: f32[6,8,384], index: 0, kind: input, shape index: {}]   ;;  %s1734_s2 = inlined_call_operand.vmem [shape: f32[128,128], index: 2, kind: input, shape index: {}]   ;;  %s1735_s3 = inlined_call_operand.vmem [shape: f32[1,128], index: 3, kind: input, shape index: {}]   ;;  %s1736_s4 = inlined_call_operand.vmem [shape: f32[8,128], index: 4, kind: output, shape index: {}]  }
   0x1   :  { %v1268_v0 = vld [vmem:[%s1732_s1 + $0x4] ss:$12 sps:$4 sm:$0xff]   ;;  %985 = vmatprep.subr.bf16.mxu1 %v1236_v1  ;;  %213 = vmatprep.mubr.bf16.mxu0 %v1237_v2  ;;  %v1275_v3 = vld [vmem:[%s1732_s1] ss:$12 sps:$4 sm:$0xff]   ;;  %v1283_v4 = vld [vmem:[%s1732_s1 + $0x1c] ss:$12 sps:$4 sm:$0xff]  }
   0x2   :  { %1001 = vmatprep.mubr.msk.bf16.mxu1 %vm1238_vm0, %v1236_v1  ;;  %181 = vmatprep.subr.bf16.mxu0 %v1268_v0  ;;  %v1289_v5 = vld [vmem:[%s1732_s1 + $0x18] ss:$12 sps:$4 sm:$0xff]   ;;  %v1295_v6 = vld [vmem:[%s1732_s1 + $0x34] ss:$12 sps:$4 sm:$0xff]   ;;  %v1306_v8 = vld [vmem:[%s1732_s1 + $0x30] ss:$12 sps:$4 sm:$0xff]  }
   0x3   :  { %182 = vmatpush1.bf16.msra.mxu0 %v1275_v3  ;;  %v1300_v7 = vld [vmem:[%s1732_s1 + $0x8] ss:$12 sps:$4 sm:$0xff]   ;;  %v1311_v9 = vld [vmem:[%s1732_s1 + $0x4c] ss:$12 sps:$4 sm:$0xff]   ;;  %v1330_v12 = vld [vmem:[%s1732_s1 + $0x64] ss:$12 sps:$4 sm:$0xff]  }
   0x4   :  { %183 = vmatprep.subr.bf16.mxu0 %v1283_v4  ;;  %986 = vmatpush3.bf16.msra.mxu1 %v1300_v7  ;;  %v1318_v10 = vld [vmem:[%s1732_s1 + $0x20] ss:$12 sps:$4 sm:$0xff]   ;;  %v1324_v11 = vld [vmem:[%s1732_s1 + $0x48] ss:$12 sps:$4 sm:$0xff]   ;;  %v1337_v13 = vld [vmem:[%s1732_s1 + $0x38] ss:$12 sps:$4 sm:$0xff]  }
   0x5   :  { %987 = vmatprep.subr.bf16.mxu1 %v1236_v1  ;;  %v1343_v14 = vld [vmem:[%s1732_s1 + $0x60] ss:$12 sps:$4 sm:$0xff]   ;;  %v1349_v15 = vld [vmem:[%s1732_s1 + $0x7c] ss:$12 sps:$4 sm:$0xff]   ;;  %v1363_v17 = vld [vmem:[%s1732_s1 + $0x78] ss:$12 sps:$4 sm:$0xff]  }
   0x6   :  { %v1356_v16 = vld [vmem:[%s1732_s1 + $0x50] ss:$12 sps:$4 sm:$0xff]   ;;  %v1369_v18 = vld [vmem:[%s1732_s1 + $0x94] ss:$12 sps:$4 sm:$0xff]   ;;  %v1388_v21 = vld [vmem:[%s1732_s1 + $0xac] ss:$12 sps:$4 sm:$0xff]  }
   0x7   :  { %184 = vmatpush1.bf16.msra.mxu0 %v1289_v5  ;;  %v1375_v19 = vld [vmem:[%s1732_s1 + $0x68] ss:$12 sps:$4 sm:$0xff]   ;;  %v1382_v20 = vld [vmem:[%s1732_s1 + $0x90] ss:$12 sps:$4 sm:$0xff]   ;;  %v1394_v22 = vld [vmem:[%s1732_s1 + $0x80] ss:$12 sps:$4 sm:$0xff]  }
   0x8   :  { %185 = vmatprep.subr.bf16.mxu0 %v1295_v6  ;;  %988 = vmatpush3.bf16.msra.mxu1 %v1318_v10  ;;  %v1401_v23 = vld [vmem:[%s1732_s1 + $0xa8] ss:$12 sps:$4 sm:$0xff]   ;;  %v1408_v24 = vld [vmem:[%s1732_s1 + $0x98] ss:$12 sps:$4 sm:$0xff]   ;;  %v1416_v25 = vld [vmem:[%s1732_s1 + $0xb0] ss:$12 sps:$4 sm:$0xff]  }
   0x9   :  { %989 = vmatprep.subr.bf16.mxu1 %v1236_v1  ;;  %v50_v26 = vld [vmem:[%s1733_s0] sm:$0xff]  ;;  %v51_v36 = vld [vmem:[%s1733_s0 + $0x8] sm:$0xff]  ;;  %v52_v41 = vld [vmem:[%s1733_s0 + $0x10] sm:$0xff] }
   0xa   :  { %v898_v52 = vld [vmem:[%s1733_s0 + $0x18] sm:$0xff]  ;;  %v899_v62 = vld [vmem:[%s1733_s0 + $0x20] sm:$0xff] }
   0xb   :  { %186 = vmatpush1.bf16.msra.mxu0 %v1306_v8 }
   0xc   :  { %187 = vmatprep.subr.bf16.mxu0 %v1311_v9  ;;  %990 = vmatpush3.bf16.msra.mxu1 %v1337_v13 }
   0xd   :  { %991 = vmatprep.subr.bf16.mxu1 %v1236_v1 }
   0xf   :  { %188 = vmatpush1.bf16.msra.mxu0 %v1324_v11 }
  0x10   :  { %189 = vmatprep.subr.bf16.mxu0 %v1330_v12  ;;  %992 = vmatpush3.bf16.msra.mxu1 %v1356_v16 }
  0x11   :  { %993 = vmatprep.subr.bf16.mxu1 %v1236_v1 }
  0x13   :  { %190 = vmatpush1.bf16.msra.mxu0 %v1343_v14 }
  0x14   :  { %191 = vmatprep.subr.bf16.mxu0 %v1349_v15  ;;  %994 = vmatpush3.bf16.msra.mxu1 %v1375_v19 }
  0x15   :  { %995 = vmatprep.subr.bf16.mxu1 %v1236_v1 }
  0x17   :  { %192 = vmatpush1.bf16.msra.mxu0 %v1363_v17 }
  0x18   :  { %193 = vmatprep.subr.bf16.mxu0 %v1369_v18  ;;  %996 = vmatpush3.bf16.msra.mxu1 %v1394_v22 }
  0x19   :  { %997 = vmatprep.subr.bf16.mxu1 %v1236_v1 }
  0x1b   :  { %194 = vmatpush1.bf16.msra.mxu0 %v1382_v20 }
  0x1c   :  { %195 = vmatprep.subr.bf16.mxu0 %v1388_v21  ;;  %998 = vmatpush3.bf16.msra.mxu1 %v1408_v24 }
  0x1d   :  { %999 = vmatprep.subr.bf16.mxu1 %v1236_v1 }
  0x1f   :  { %196 = vmatpush1.bf16.msra.mxu0 %v1401_v23 }
  0x20   :  { %281 = vmatprep.subr.bf16.mxu0 %v1268_v0  ;;  %1000 = vmatpush3.bf16.msra.mxu1 %v1416_v25 }
  0x21   :  { %1005 = vmatprep.subr.bf16.mxu1 %v1236_v1 }
  0x22   :  { %214 = vmatmul.mubr.bf16.vlgmr.msra.gmra.mrb[0].mxu0 %v1237_v2 }
  0x23   :  { %282 = vmatpush1.bf16.msra.mxu0 %v1275_v3  ;;  %313 = vmatprep.mubr.bf16.mxu0 %v1237_v2 }
  0x24   :  { %283 = vmatprep.subr.bf16.mxu0 %v1283_v4  ;;  %1002 = vmatmul.mubr.bf16.vlgmr.msra.gmra.mrb[0].mxu1 %v1237_v2 }
  0x25   :  { %1006 = vmatpush3.bf16.msra.mxu1 %v1300_v7  ;;  %1021 = vmatprep.mubr.msk.bf16.mxu1 %vm1238_vm0, %v1236_v1 }
  0x26   :  { %1007 = vmatprep.subr.bf16.mxu1 %v1236_v1 }
  0x27   :  { %284 = vmatpush1.bf16.msra.mxu0 %v1289_v5 }
  0x28   :  { %285 = vmatprep.subr.bf16.mxu0 %v1295_v6 }
  0x29   :  { %1008 = vmatpush3.bf16.msra.mxu1 %v1318_v10 }
  0x2a   :  { %1009 = vmatprep.subr.bf16.mxu1 %v1236_v1 }
  0x2b   :  { %286 = vmatpush1.bf16.msra.mxu0 %v1306_v8 }
  0x2c   :  { %287 = vmatprep.subr.bf16.mxu0 %v1311_v9 }
  0x2d   :  { %1010 = vmatpush3.bf16.msra.mxu1 %v1337_v13 }
  0x2e   :  { %1011 = vmatprep.subr.bf16.mxu1 %v1236_v1 }
  0x2f   :  { %288 = vmatpush1.bf16.msra.mxu0 %v1324_v11 }
  0x30   :  { %289 = vmatprep.subr.bf16.mxu0 %v1330_v12 }
  0x31   :  { %1012 = vmatpush3.bf16.msra.mxu1 %v1356_v16 }
  0x32   :  { %1013 = vmatprep.subr.bf16.mxu1 %v1236_v1 }
  0x33   :  { %290 = vmatpush1.bf16.msra.mxu0 %v1343_v14 }
  0x34   :  { %291 = vmatprep.subr.bf16.mxu0 %v1349_v15 }
  0x35   :  { %1014 = vmatpush3.bf16.msra.mxu1 %v1375_v19 }
  0x36   :  { %1015 = vmatprep.subr.bf16.mxu1 %v1236_v1 }
  0x37   :  { %292 = vmatpush1.bf16.msra.mxu0 %v1363_v17 }
  0x38   :  { %293 = vmatprep.subr.bf16.mxu0 %v1369_v18 }
  0x39   :  { %1016 = vmatpush3.bf16.msra.mxu1 %v1394_v22 }
  0x3a   :  { %1017 = vmatprep.subr.bf16.mxu1 %v1236_v1 }
  0x3b   :  { %294 = vmatpush1.bf16.msra.mxu0 %v1382_v20 }
  0x3c   :  { %295 = vmatprep.subr.bf16.mxu0 %v1388_v21 }
  0x3d   :  { %1018 = vmatpush3.bf16.msra.mxu1 %v1408_v24 }
  0x3e   :  { %1019 = vmatprep.subr.bf16.mxu1 %v1236_v1 }
  0x3f   :  { %296 = vmatpush1.bf16.msra.mxu0 %v1401_v23 }
  0x40   :  { %381 = vmatprep.subr.bf16.mxu0 %v1268_v0 }
  0x41   :  { %1020 = vmatpush3.bf16.msra.mxu1 %v1416_v25 }
  0x42   :  { %1025 = vmatprep.subr.bf16.mxu1 %v1236_v1 }
  0xf5   :  { %v215_v27 = vpop.f32.mrb[0].mxu0 }
  0xf6   :  { %v262_v28 = vadd.f32 %v215_v27, %v50_v26  ;;  %v217_v29 = vpop.f32.mrb[1].mxu0 }
  0xf7   :  { %v219_v30 = vpop.f32.mrb[2].mxu0  ;;  %v256_v32 = vpop.f32.mrb[0].mxu1  ;;  %v263_v37 = vadd.f32 %v217_v29, %v51_v36  ;;  %v900_v29 = vld [vmem:[%s1733_s0 + $0x28] sm:$0xff] }
  0xf8   :  { %1200 = vtanh.f32 %v262_v28  ;;  %v220_v31 = vpop.f32.mrb[3].mxu0  ;;  %v1003_v33 = vpop.f32.mrb[1].mxu1 }
  0xf9   :  { %v259_v34 = vpop.f32.mrb[2].mxu1  ;;  %1202 = vtanh.f32 %v263_v37 }
  0xfa   :  { %v1004_v35 = vpop.f32.mrb[3].mxu1 }
 0x102   :  { %v1201_v38 = vpop.eup %1200 }
 0x103   :  { %v266_v39 = vadd.f32 1.0, %v1201_v38  ;;  %v1203_v44 = vpop.eup %1202 }
 0x104   :  { %v267_v45 = vadd.f32 1.0, %v1203_v44 }
 0x105   :  { %v268_v40 = vmul.f32 0.5, %v266_v39 }
 0x106   :  { %v269_v47 = vmul.f32 0.5, %v267_v45 }
 0x107   :  { %v270_v42 = vmul.f32 %v268_v40, %v256_v32  ;;  %v901_v40 = vld [vmem:[%s1733_s0 + $0x30] sm:$0xff] }
 0x109   :  { %v271_v43 = vadd.f32 %v270_v42, %v52_v41 }
 0x10b   :  { %1204 = vtanh.f32 %v271_v43 }
 0x115   :  { %v1205_v46 = vpop.eup %1204 }
 0x116   :  { %v273_v48 = vsub.f32 0.0, %v1205_v46 }
 0x118   :  { %v274_v49 = vmul.f32 %v273_v48, %v269_v47 }
 0x11a   :  { %v1468_v50 = vadd.f32 %v1205_v46, %v274_v49 }
 0x11c   :  { %v280_v51 = vpack.c.bf16 %v1468_v50, %v1468_v50 }
 0x11e   :  { %314 = vmatmul.mubr.bf16.vlgmr.msra.gmra.mrb[4].mxu0 %v280_v51  ;;  %1022 = vmatmul.mubr.bf16.vlgmr.msra.gmra.mrb[4].mxu1 %v280_v51 }
 0x11f   :  { %382 = vmatpush1.bf16.msra.mxu0 %v1275_v3  ;;  %1026 = vmatpush3.bf16.msra.mxu1 %v1300_v7 }
 0x120   :  { %383 = vmatprep.subr.bf16.mxu0 %v1283_v4  ;;  %1027 = vmatprep.subr.bf16.mxu1 %v1236_v1 }
 0x121   :  { %413 = vmatprep.mubr.bf16.mxu0 %v1237_v2  ;;  %1041 = vmatprep.mubr.msk.bf16.mxu1 %vm1238_vm0, %v1236_v1 }
 0x123   :  { %384 = vmatpush1.bf16.msra.mxu0 %v1289_v5  ;;  %1028 = vmatpush3.bf16.msra.mxu1 %v1318_v10 }
 0x124   :  { %385 = vmatprep.subr.bf16.mxu0 %v1295_v6  ;;  %1029 = vmatprep.subr.bf16.mxu1 %v1236_v1 }
 0x127   :  { %386 = vmatpush1.bf16.msra.mxu0 %v1306_v8  ;;  %1030 = vmatpush3.bf16.msra.mxu1 %v1337_v13 }
 0x128   :  { %387 = vmatprep.subr.bf16.mxu0 %v1311_v9  ;;  %1031 = vmatprep.subr.bf16.mxu1 %v1236_v1 }
 0x12b   :  { %388 = vmatpush1.bf16.msra.mxu0 %v1324_v11  ;;  %1032 = vmatpush3.bf16.msra.mxu1 %v1356_v16 }
 0x12c   :  { %389 = vmatprep.subr.bf16.mxu0 %v1330_v12  ;;  %1033 = vmatprep.subr.bf16.mxu1 %v1236_v1 }
 0x12f   :  { %390 = vmatpush1.bf16.msra.mxu0 %v1343_v14  ;;  %1034 = vmatpush3.bf16.msra.mxu1 %v1375_v19 }
 0x130   :  { %391 = vmatprep.subr.bf16.mxu0 %v1349_v15  ;;  %1035 = vmatprep.subr.bf16.mxu1 %v1236_v1 }
 0x133   :  { %392 = vmatpush1.bf16.msra.mxu0 %v1363_v17  ;;  %1036 = vmatpush3.bf16.msra.mxu1 %v1394_v22 }
 0x134   :  { %393 = vmatprep.subr.bf16.mxu0 %v1369_v18  ;;  %1037 = vmatprep.subr.bf16.mxu1 %v1236_v1 }
 0x137   :  { %394 = vmatpush1.bf16.msra.mxu0 %v1382_v20  ;;  %1038 = vmatpush3.bf16.msra.mxu1 %v1408_v24 }
 0x138   :  { %395 = vmatprep.subr.bf16.mxu0 %v1388_v21  ;;  %1039 = vmatprep.subr.bf16.mxu1 %v1236_v1 }
 0x13b   :  { %396 = vmatpush1.bf16.msra.mxu0 %v1401_v23  ;;  %1040 = vmatpush3.bf16.msra.mxu1 %v1416_v25 }
 0x13c   :  { %481 = vmatprep.subr.bf16.mxu0 %v1268_v0  ;;  %1045 = vmatprep.subr.bf16.mxu1 %v1236_v1 }
 0x1f1   :  { %v315_v53 = vpop.f32.mrb[4].mxu0  ;;  %v356_v54 = vpop.f32.mrb[4].mxu1 }
 0x1f2   :  { %v362_v55 = vadd.f32 %v898_v52, %v315_v53  ;;  %v317_v56 = vpop.f32.mrb[5].mxu0  ;;  %v1023_v57 = vpop.f32.mrb[5].mxu1 }
 0x1f3   :  { %v319_v58 = vpop.f32.mrb[6].mxu0  ;;  %v359_v59 = vpop.f32.mrb[6].mxu1  ;;  %v363_v63 = vadd.f32 %v899_v62, %v317_v56 }
 0x1f4   :  { %1206 = vtanh.f32 %v362_v55  ;;  %v320_v60 = vpop.f32.mrb[7].mxu0  ;;  %v1024_v61 = vpop.f32.mrb[7].mxu1  ;;  %v903_v55 = vld [vmem:[%s1733_s0 + $0x40] sm:$0xff] }
 0x1f5   :  { %1208 = vtanh.f32 %v363_v63 }
 0x1fe   :  { %v1207_v26 = vpop.eup %1206 }
 0x1ff   :  { %v366_v27 = vadd.f32 1.0, %v1207_v26  ;;  %v1209_v32 = vpop.eup %1208 }
 0x200   :  { %v367_v33 = vadd.f32 1.0, %v1209_v32 }
 0x201   :  { %v368_v28 = vmul.f32 0.5, %v366_v27 }
 0x202   :  { %v369_v35 = vmul.f32 0.5, %v367_v33 }
 0x203   :  { %v370_v30 = vmul.f32 %v368_v28, %v356_v54  ;;  %v904_v28 = vld [vmem:[%s1733_s0 + $0x48] sm:$0xff] }
 0x205   :  { %v371_v31 = vadd.f32 %v900_v29, %v370_v30 }
 0x207   :  { %1210 = vtanh.f32 %v371_v31 }
 0x211   :  { %v1211_v34 = vpop.eup %1210 }
 0x212   :  { %v373_v36 = vsub.f32 %v1468_v50, %v1211_v34  ;;  %v902_v50 = vld [vmem:[%s1733_s0 + $0x38] sm:$0xff] }
 0x214   :  { %v374_v37 = vmul.f32 %v373_v36, %v369_v35 }
 0x216   :  { %v1517_v38 = vadd.f32 %v1211_v34, %v374_v37 }
 0x218   :  { %v380_v39 = vpack.c.bf16 %v1517_v38, %v1517_v38 }
 0x21a   :  { %414 = vmatmul.mubr.bf16.vlgmr.msra.gmra.mrb[8].mxu0 %v380_v39  ;;  %1042 = vmatmul.mubr.bf16.vlgmr.msra.gmra.mrb[8].mxu1 %v380_v39 }
 0x21b   :  { %482 = vmatpush1.bf16.msra.mxu0 %v1275_v3  ;;  %1046 = vmatpush3.bf16.msra.mxu1 %v1300_v7 }
 0x21c   :  { %483 = vmatprep.subr.bf16.mxu0 %v1283_v4  ;;  %1047 = vmatprep.subr.bf16.mxu1 %v1236_v1 }
 0x21d   :  { %513 = vmatprep.mubr.bf16.mxu0 %v1237_v2  ;;  %1061 = vmatprep.mubr.msk.bf16.mxu1 %vm1238_vm0, %v1236_v1 }
 0x21f   :  { %484 = vmatpush1.bf16.msra.mxu0 %v1289_v5  ;;  %1048 = vmatpush3.bf16.msra.mxu1 %v1318_v10 }
 0x220   :  { %485 = vmatprep.subr.bf16.mxu0 %v1295_v6  ;;  %1049 = vmatprep.subr.bf16.mxu1 %v1236_v1 }
 0x223   :  { %486 = vmatpush1.bf16.msra.mxu0 %v1306_v8  ;;  %1050 = vmatpush3.bf16.msra.mxu1 %v1337_v13 }
 0x224   :  { %487 = vmatprep.subr.bf16.mxu0 %v1311_v9  ;;  %1051 = vmatprep.subr.bf16.mxu1 %v1236_v1 }
 0x227   :  { %488 = vmatpush1.bf16.msra.mxu0 %v1324_v11  ;;  %1052 = vmatpush3.bf16.msra.mxu1 %v1356_v16 }
 0x228   :  { %489 = vmatprep.subr.bf16.mxu0 %v1330_v12  ;;  %1053 = vmatprep.subr.bf16.mxu1 %v1236_v1 }
 0x22b   :  { %490 = vmatpush1.bf16.msra.mxu0 %v1343_v14  ;;  %1054 = vmatpush3.bf16.msra.mxu1 %v1375_v19 }
 0x22c   :  { %491 = vmatprep.subr.bf16.mxu0 %v1349_v15  ;;  %1055 = vmatprep.subr.bf16.mxu1 %v1236_v1 }
 0x22f   :  { %492 = vmatpush1.bf16.msra.mxu0 %v1363_v17  ;;  %1056 = vmatpush3.bf16.msra.mxu1 %v1394_v22 }
 0x230   :  { %493 = vmatprep.subr.bf16.mxu0 %v1369_v18  ;;  %1057 = vmatprep.subr.bf16.mxu1 %v1236_v1 }
 0x233   :  { %494 = vmatpush1.bf16.msra.mxu0 %v1382_v20  ;;  %1058 = vmatpush3.bf16.msra.mxu1 %v1408_v24 }
 0x234   :  { %495 = vmatprep.subr.bf16.mxu0 %v1388_v21  ;;  %1059 = vmatprep.subr.bf16.mxu1 %v1236_v1 }
 0x237   :  { %496 = vmatpush1.bf16.msra.mxu0 %v1401_v23  ;;  %1060 = vmatpush3.bf16.msra.mxu1 %v1416_v25 }
 0x238   :  { %581 = vmatprep.subr.bf16.mxu0 %v1268_v0  ;;  %1065 = vmatprep.subr.bf16.mxu1 %v1236_v1 }
 0x2ed   :  { %v415_v41 = vpop.f32.mrb[8].mxu0  ;;  %v456_v42 = vpop.f32.mrb[8].mxu1 }
 0x2ee   :  { %v462_v43 = vadd.f32 %v901_v40, %v415_v41  ;;  %v417_v44 = vpop.f32.mrb[9].mxu0  ;;  %v1043_v45 = vpop.f32.mrb[9].mxu1 }
 0x2ef   :  { %v419_v46 = vpop.f32.mrb[10].mxu0  ;;  %v459_v47 = vpop.f32.mrb[10].mxu1  ;;  %v463_v51 = vadd.f32 %v902_v50, %v417_v44 }
 0x2f0   :  { %1212 = vtanh.f32 %v462_v43  ;;  %v420_v48 = vpop.f32.mrb[11].mxu0  ;;  %v1044_v49 = vpop.f32.mrb[11].mxu1 }
 0x2f1   :  { %1214 = vtanh.f32 %v463_v51 }
 0x2fa   :  { %v1213_v52 = vpop.eup %1212 }
 0x2fb   :  { %v466_v53 = vadd.f32 1.0, %v1213_v52  ;;  %v1215_v58 = vpop.eup %1214 }
 0x2fc   :  { %v467_v59 = vadd.f32 1.0, %v1215_v58  ;;  %v1239_v58 = vmov 0.0|0.0  }
 0x2fd   :  { %v468_v54 = vmul.f32 0.5, %v466_v53 }
 0x2fe   :  { %v469_v61 = vmul.f32 0.5, %v467_v59  ;;  %v778_v59 = vld [vmem:[%s1734_s2 + $0x10] sm:$0xff] }
 0x2ff   :  { %v470_v56 = vmul.f32 %v468_v54, %v456_v42  ;;  %v906_v42 = vld [vmem:[%s1733_s0 + $0x58] sm:$0xff] }
 0x301   :  { %v471_v57 = vadd.f32 %v903_v55, %v470_v56  ;;  %v776_v55 = vld [vmem:[%s1734_s2] sm:$0xff]  ;;  %v777_v56 = vld [vmem:[%s1734_s2 + $0x8] sm:$0xff] }
 0x303   :  { %1216 = vtanh.f32 %v471_v57  ;;  %v1141_v57 = vpack.c.bf16 %v777_v56, %v776_v55 }
 0x30d   :  { %v1217_v60 = vpop.eup %1216 }
 0x30e   :  { %v473_v62 = vsub.f32 %v1517_v38, %v1217_v60 }
 0x310   :  { %v474_v63 = vmul.f32 %v473_v62, %v469_v61  ;;  %v780_v61 = vld [vmem:[%s1734_s2 + $0x20] sm:$0xff]  ;;  %v781_v62 = vld [vmem:[%s1734_s2 + $0x28] sm:$0xff] }
 0x312   :  { %v1566_v26 = vadd.f32 %v1217_v60, %v474_v63  ;;  %v1147_v63 = vpack.c.bf16 %v781_v62, %v780_v61 }
 0x314   :  { %v480_v27 = vpack.c.bf16 %v1566_v26, %v1566_v26 }
 0x316   :  { %514 = vmatmul.mubr.bf16.vlgmr.msra.gmra.mrb[12].mxu0 %v480_v27  ;;  %1062 = vmatmul.mubr.bf16.vlgmr.msra.gmra.mrb[12].mxu1 %v480_v27  ;;  %v783_v27 = vld [vmem:[%s1734_s2 + $0x38] sm:$0xff] }
 0x317   :  { %582 = vmatpush1.bf16.msra.mxu0 %v1275_v3  ;;  %1066 = vmatpush3.bf16.msra.mxu1 %v1300_v7 }
 0x318   :  { %583 = vmatprep.subr.bf16.mxu0 %v1283_v4  ;;  %1067 = vmatprep.subr.bf16.mxu1 %v1236_v1 }
 0x319   :  { %613 = vmatprep.mubr.bf16.mxu0 %v1237_v2  ;;  %1081 = vmatprep.mubr.msk.bf16.mxu1 %vm1238_vm0, %v1236_v1 }
 0x31b   :  { %584 = vmatpush1.bf16.msra.mxu0 %v1289_v5  ;;  %1068 = vmatpush3.bf16.msra.mxu1 %v1318_v10 }
 0x31c   :  { %585 = vmatprep.subr.bf16.mxu0 %v1295_v6  ;;  %1069 = vmatprep.subr.bf16.mxu1 %v1236_v1 }
 0x31f   :  { %586 = vmatpush1.bf16.msra.mxu0 %v1306_v8  ;;  %1070 = vmatpush3.bf16.msra.mxu1 %v1337_v13 }
 0x320   :  { %587 = vmatprep.subr.bf16.mxu0 %v1311_v9  ;;  %1071 = vmatprep.subr.bf16.mxu1 %v1236_v1 }
 0x323   :  { %588 = vmatpush1.bf16.msra.mxu0 %v1324_v11  ;;  %1072 = vmatpush3.bf16.msra.mxu1 %v1356_v16 }
 0x324   :  { %589 = vmatprep.subr.bf16.mxu0 %v1330_v12  ;;  %1073 = vmatprep.subr.bf16.mxu1 %v1236_v1 }
 0x327   :  { %590 = vmatpush1.bf16.msra.mxu0 %v1343_v14  ;;  %1074 = vmatpush3.bf16.msra.mxu1 %v1375_v19 }
 0x328   :  { %591 = vmatprep.subr.bf16.mxu0 %v1349_v15  ;;  %1075 = vmatprep.subr.bf16.mxu1 %v1236_v1 }
 0x32b   :  { %592 = vmatpush1.bf16.msra.mxu0 %v1363_v17  ;;  %1076 = vmatpush3.bf16.msra.mxu1 %v1394_v22 }
 0x32c   :  { %593 = vmatprep.subr.bf16.mxu0 %v1369_v18  ;;  %1077 = vmatprep.subr.bf16.mxu1 %v1236_v1 }
 0x32f   :  { %594 = vmatpush1.bf16.msra.mxu0 %v1382_v20  ;;  %1078 = vmatpush3.bf16.msra.mxu1 %v1408_v24 }
 0x330   :  { %595 = vmatprep.subr.bf16.mxu0 %v1388_v21  ;;  %1079 = vmatprep.subr.bf16.mxu1 %v1236_v1 }
 0x333   :  { %596 = vmatpush1.bf16.msra.mxu0 %v1401_v23  ;;  %1080 = vmatpush3.bf16.msra.mxu1 %v1416_v25 }
 0x334   :  { %681 = vmatprep.subr.bf16.mxu0 %v1268_v0  ;;  %1085 = vmatprep.subr.bf16.mxu1 %v1236_v1  ;;  %v905_v0 = vld [vmem:[%s1733_s0 + $0x50] sm:$0xff] }
 0x3e9   :  { %v515_v29 = vpop.f32.mrb[12].mxu0  ;;  %v556_v30 = vpop.f32.mrb[12].mxu1 }
 0x3ea   :  { %v562_v31 = vadd.f32 %v904_v28, %v515_v29  ;;  %v517_v32 = vpop.f32.mrb[13].mxu0  ;;  %v1063_v33 = vpop.f32.mrb[13].mxu1  ;;  %v784_v29 = vld [vmem:[%s1734_s2 + $0x40] sm:$0xff] }
 0x3eb   :  { %v519_v34 = vpop.f32.mrb[14].mxu0  ;;  %v559_v35 = vpop.f32.mrb[14].mxu1  ;;  %v563_v38 = vadd.f32 %v905_v0, %v517_v32  ;;  %v786_v32 = vld [vmem:[%s1734_s2 + $0x50] sm:$0xff]  ;;  %v787_v33 = vld [vmem:[%s1734_s2 + $0x58] sm:$0xff] }
 0x3ec   :  { %1218 = vtanh.f32 %v562_v31  ;;  %v520_v36 = vpop.f32.mrb[15].mxu0  ;;  %v1064_v37 = vpop.f32.mrb[15].mxu1  ;;  %v1156_v34 = vpack.c.bf16 %v787_v33, %v786_v32  ;;  %v788_v35 = vld [vmem:[%s1734_s2 + $0x60] sm:$0xff]  ;;  %v790_v0 = vld [vmem:[%s1734_s2 + $0x70] sm:$0xff] }
 0x3ed   :  { %1220 = vtanh.f32 %v563_v38  ;;  %v789_v36 = vld [vmem:[%s1734_s2 + $0x68] sm:$0xff]  ;;  %v791_v38 = vld [vmem:[%s1734_s2 + $0x78] sm:$0xff] }
 0x3ee   :  { %v1159_v37 = vpack.c.bf16 %v789_v36, %v788_v35 }
 0x3f6   :  { %v1219_v39 = vpop.eup %1218 }
 0x3f7   :  { %v566_v40 = vadd.f32 1.0, %v1219_v39  ;;  %v1221_v45 = vpop.eup %1220  ;;  %v1162_v39 = vpack.c.bf16 %v791_v38, %v790_v0 }
 0x3f8   :  { %v567_v46 = vadd.f32 1.0, %v1221_v45 }
 0x3f9   :  { %v568_v41 = vmul.f32 0.5, %v566_v40  ;;  %v910_v40 = vld [vmem:[%s1733_s0 + $0x78] sm:$0xff] }
 0x3fa   :  { %v569_v48 = vmul.f32 0.5, %v567_v46 }
 0x3fb   :  { %v570_v43 = vmul.f32 %v568_v41, %v556_v30  ;;  %v785_v30 = vld [vmem:[%s1734_s2 + $0x48] sm:$0xff] }
 0x3fc   :  { %v1153_v31 = vpack.c.bf16 %v785_v30, %v784_v29 }
 0x3fd   :  { %v571_v44 = vadd.f32 %v906_v42, %v570_v43 }
 0x3ff   :  { %1222 = vtanh.f32 %v571_v44 }
 0x409   :  { %v1223_v47 = vpop.eup %1222 }
 0x40a   :  { %v573_v49 = vsub.f32 %v1566_v26, %v1223_v47  ;;  %v782_v26 = vld [vmem:[%s1734_s2 + $0x30] sm:$0xff] }
 0x40b   :  { %v1150_v28 = vpack.c.bf16 %v783_v27, %v782_v26 }
 0x40c   :  { %v574_v50 = vmul.f32 %v573_v49, %v569_v48 }
 0x40e   :  { %v1615_v51 = vadd.f32 %v1223_v47, %v574_v50  ;;  %v911_v50 = vld [vmem:[%s1733_s0 + $0x80] sm:$0xff] }
 0x410   :  { %v580_v52 = vpack.c.bf16 %v1615_v51, %v1615_v51 }
 0x412   :  { %614 = vmatmul.mubr.bf16.vlgmr.msra.gmra.mrb[16].mxu0 %v580_v52  ;;  %1082 = vmatmul.mubr.bf16.vlgmr.msra.gmra.mrb[16].mxu1 %v580_v52 }
 0x413   :  { %682 = vmatpush1.bf16.msra.mxu0 %v1275_v3  ;;  %1086 = vmatpush3.bf16.msra.mxu1 %v1300_v7 }
 0x414   :  { %683 = vmatprep.subr.bf16.mxu0 %v1283_v4  ;;  %1087 = vmatprep.subr.bf16.mxu1 %v1236_v1 }
 0x415   :  { %713 = vmatprep.mubr.bf16.mxu0 %v1237_v2  ;;  %1101 = vmatprep.mubr.msk.bf16.mxu1 %vm1238_vm0, %v1236_v1  ;;  %v907_v2 = vld [vmem:[%s1733_s0 + $0x60] sm:$0xff] }
 0x417   :  { %684 = vmatpush1.bf16.msra.mxu0 %v1289_v5  ;;  %1088 = vmatpush3.bf16.msra.mxu1 %v1318_v10 }
 0x418   :  { %685 = vmatprep.subr.bf16.mxu0 %v1295_v6  ;;  %1089 = vmatprep.subr.bf16.mxu1 %v1236_v1 }
 0x41b   :  { %686 = vmatpush1.bf16.msra.mxu0 %v1306_v8  ;;  %1090 = vmatpush3.bf16.msra.mxu1 %v1337_v13 }
 0x41c   :  { %687 = vmatprep.subr.bf16.mxu0 %v1311_v9  ;;  %1091 = vmatprep.subr.bf16.mxu1 %v1236_v1 }
 0x41f   :  { %688 = vmatpush1.bf16.msra.mxu0 %v1324_v11  ;;  %1092 = vmatpush3.bf16.msra.mxu1 %v1356_v16 }
 0x420   :  { %689 = vmatprep.subr.bf16.mxu0 %v1330_v12  ;;  %1093 = vmatprep.subr.bf16.mxu1 %v1236_v1  ;;  %v908_v12 = vld [vmem:[%s1733_s0 + $0x68] sm:$0xff] }
 0x423   :  { %690 = vmatpush1.bf16.msra.mxu0 %v1343_v14  ;;  %1094 = vmatpush3.bf16.msra.mxu1 %v1375_v19 }
 0x424   :  { %691 = vmatprep.subr.bf16.mxu0 %v1349_v15  ;;  %1095 = vmatprep.subr.bf16.mxu1 %v1236_v1 }
 0x427   :  { %692 = vmatpush1.bf16.msra.mxu0 %v1363_v17  ;;  %1096 = vmatpush3.bf16.msra.mxu1 %v1394_v22  ;;  %v909_v17 = vld [vmem:[%s1733_s0 + $0x70] sm:$0xff] }
 0x428   :  { %693 = vmatprep.subr.bf16.mxu0 %v1369_v18  ;;  %1097 = vmatprep.subr.bf16.mxu1 %v1236_v1 }
 0x42b   :  { %694 = vmatpush1.bf16.msra.mxu0 %v1382_v20  ;;  %1098 = vmatpush3.bf16.msra.mxu1 %v1408_v24 }
 0x42c   :  { %695 = vmatprep.subr.bf16.mxu0 %v1388_v21  ;;  %1099 = vmatprep.subr.bf16.mxu1 %v1236_v1 }
 0x42f   :  { %696 = vmatpush1.bf16.msra.mxu0 %v1401_v23  ;;  %1100 = vmatpush3.bf16.msra.mxu1 %v1416_v25 }
 0x430   :  { %1140 = vmatprep.subr.bf16.mxu0 %v1239_v58 }
 0x4e5   :  { %v615_v3 = vpop.f32.mrb[16].mxu0  ;;  %v656_v4 = vpop.f32.mrb[16].mxu1 }
 0x4e6   :  { %v662_v5 = vadd.f32 %v907_v2, %v615_v3  ;;  %v617_v6 = vpop.f32.mrb[17].mxu0  ;;  %v1083_v7 = vpop.f32.mrb[17].mxu1 }
 0x4e7   :  { %v619_v8 = vpop.f32.mrb[18].mxu0  ;;  %v659_v9 = vpop.f32.mrb[18].mxu1  ;;  %v663_v13 = vadd.f32 %v908_v12, %v617_v6 }
 0x4e8   :  { %1224 = vtanh.f32 %v662_v5  ;;  %v620_v10 = vpop.f32.mrb[19].mxu0  ;;  %v1084_v11 = vpop.f32.mrb[19].mxu1 }
 0x4e9   :  { %1226 = vtanh.f32 %v663_v13 }
 0x4f2   :  { %v1225_v14 = vpop.eup %1224 }
 0x4f3   :  { %v666_v15 = vadd.f32 1.0, %v1225_v14  ;;  %v1227_v20 = vpop.eup %1226  ;;  %v913_v14 = vld [vmem:[%s1735_s3] ss:$0 sm:$0xff] }
 0x4f4   :  { %v667_v21 = vadd.f32 1.0, %v1227_v20 }
 0x4f5   :  { %v668_v16 = vmul.f32 0.5, %v666_v15 }
 0x4f6   :  { %v669_v23 = vmul.f32 0.5, %v667_v21 }
 0x4f7   :  { %v670_v18 = vmul.f32 %v668_v16, %v656_v4  ;;  %v912_v4 = vld [vmem:[%s1733_s0 + $0x88] sm:$0xff] }
 0x4f9   :  { %v671_v19 = vadd.f32 %v909_v17, %v670_v18 }
 0x4fb   :  { %1228 = vtanh.f32 %v671_v19 }
 0x505   :  { %v1229_v22 = vpop.eup %1228 }
 0x506   :  { %v673_v24 = vsub.f32 %v1615_v51, %v1229_v22 }
 0x508   :  { %v674_v25 = vmul.f32 %v673_v24, %v669_v23 }
 0x50a   :  { %v1662_v53 = vadd.f32 %v1229_v22, %v674_v25 }
 0x50c   :  { %v680_v54 = vpack.c.bf16 %v1662_v53, %v1662_v53 }
 0x50e   :  { %714 = vmatmul.mubr.bf16.vlgmr.msra.gmra.mrb[20].mxu0 %v680_v54  ;;  %1102 = vmatmul.mubr.bf16.vlgmr.msra.gmra.mrb[20].mxu1 %v680_v54 }
 0x50f   :  { %1137 = vmatprep.mubr.msk.f32.mxu0 %vm1238_vm0, %v1236_v1  ;;  %1142 = vmatpush3.bf16.msra.mxu0 %v1141_v57  ;;  %v779_v1 = vld [vmem:[%s1734_s2 + $0x18] sm:$0xff] }
 0x510   :  { %1143 = vmatprep.subr.bf16.mxu0 %v1239_v58  ;;  %v1144_v60 = vpack.c.bf16 %v779_v1, %v778_v59 }
 0x513   :  { %1145 = vmatpush3.bf16.msra.mxu0 %v1144_v60 }
 0x514   :  { %1146 = vmatprep.subr.bf16.mxu0 %v1239_v58 }
 0x517   :  { %1148 = vmatpush3.bf16.msra.mxu0 %v1147_v63 }
 0x518   :  { %1149 = vmatprep.subr.bf16.mxu0 %v1239_v58 }
 0x51b   :  { %1151 = vmatpush3.bf16.msra.mxu0 %v1150_v28 }
 0x51c   :  { %1152 = vmatprep.subr.bf16.mxu0 %v1239_v58 }
 0x51f   :  { %1154 = vmatpush3.bf16.msra.mxu0 %v1153_v31 }
 0x520   :  { %1155 = vmatprep.subr.bf16.mxu0 %v1239_v58 }
 0x523   :  { %1157 = vmatpush3.bf16.msra.mxu0 %v1156_v34 }
 0x524   :  { %1158 = vmatprep.subr.bf16.mxu0 %v1239_v58 }
 0x527   :  { %1160 = vmatpush3.bf16.msra.mxu0 %v1159_v37 }
 0x528   :  { %1161 = vmatprep.subr.bf16.mxu0 %v1239_v58 }
 0x52b   :  { %1163 = vmatpush3.bf16.msra.mxu0 %v1162_v39 }
 0x5e1   :  { %v715_v41 = vpop.f32.mrb[20].mxu0  ;;  %v756_v42 = vpop.f32.mrb[20].mxu1 }
 0x5e2   :  { %v762_v43 = vadd.f32 %v910_v40, %v715_v41  ;;  %v717_v44 = vpop.f32.mrb[21].mxu0  ;;  %v1103_v45 = vpop.f32.mrb[21].mxu1 }
 0x5e3   :  { %v719_v46 = vpop.f32.mrb[22].mxu0  ;;  %v759_v47 = vpop.f32.mrb[22].mxu1  ;;  %v763_v51 = vadd.f32 %v911_v50, %v717_v44 }
 0x5e4   :  { %1230 = vtanh.f32 %v762_v43  ;;  %v720_v48 = vpop.f32.mrb[23].mxu0  ;;  %v1104_v49 = vpop.f32.mrb[23].mxu1 }
 0x5e5   :  { %1232 = vtanh.f32 %v763_v51 }
 0x5ee   :  { %v1231_v52 = vpop.eup %1230 }
 0x5ef   :  { %v766_v2 = vadd.f32 1.0, %v1231_v52  ;;  %v1233_v7 = vpop.eup %1232 }
 0x5f0   :  { %v767_v8 = vadd.f32 1.0, %v1233_v7 }
 0x5f1   :  { %v768_v3 = vmul.f32 0.5, %v766_v2 }
 0x5f2   :  { %v769_v10 = vmul.f32 0.5, %v767_v8 }
 0x5f3   :  { %v770_v5 = vmul.f32 %v768_v3, %v756_v42 }
 0x5f5   :  { %v771_v6 = vadd.f32 %v912_v4, %v770_v5 }
 0x5f7   :  { %1234 = vtanh.f32 %v771_v6 }
 0x601   :  { %v1235_v9 = vpop.eup %1234 }
 0x602   :  { %v773_v11 = vsub.f32 %v1662_v53, %v1235_v9 }
 0x604   :  { %v774_v12 = vmul.f32 %v773_v11, %v769_v10 }
 0x606   :  { %v775_v13 = vadd.f32 %v1235_v9, %v774_v12 }
 0x608   :  { %1138 = vmatmul.mubr.f32.vlgmr.msra.gmra.mrb[24].mxu0 %v775_v13 }
 0x6db   :  { %v865_v15 = vpop.f32.mrb[24].mxu0 }
 0x6dc   :  { %v866_v16 = vadd.f32 %v913_v14, %v865_v15  ;;  %v1139_v17 = vpop.f32.mrb[25].mxu0 }
 0x6de   :  { %869 = vst [vmem:[%s1736_s4] sm:$0xff] %v866_v16 }

</bundles_post_ra>
